<compile_context>
chip_gen: v7x
topology: tpu7x:2x2x1
jax: 0.10.0
libtpu: 0.0.40
codegen_flags: <defaults>
</compile_context>

<pallas_src>
import jax
import jax.numpy as jnp
from jax.experimental import pallas as pl
from jax.experimental.pallas import tpu as pltpu


# Contract the last dim of both operands: (1, D) x (TB, D) -> (1, TB).
# Mosaic consumes the (TB, D) tile in its natural layout for this transposed-RHS
# contraction (no materialized transpose of the big tile), and the result strip
# comes out lane-dense.
_NT_DIM_NUMBERS = (((1,), (1,)), ((), ()))


def _reweight_kernel(x_ref, w_ref, o_ref):
    # x_ref: (TB, D), w_ref: (1, D), o_ref: (1, 1, TB)
    res = jax.lax.dot_general(
        w_ref[...], x_ref[...], _NT_DIM_NUMBERS,
        preferred_element_type=jnp.float32,
    )  # (1, TB), f32 accumulation
    o_ref[...] = res.reshape(o_ref.shape).astype(o_ref.dtype)


def _round_up(x, m):
    return (x + m - 1) // m * m


_X_TILE_BYTES = 8 * 1024 * 1024        # per x tile; 2x double-buffer ~16 MiB
_VMEM_LIMIT_BYTES = 48 * 1024 * 1024   # headroom under v7x's 64 MiB per-TC VMEM


def _choose_block_rows(batch, d, dtype):
    """Rows per x-tile.

    * ~8 MiB per x tile (per-step overhead amortized; ~16 MiB double-buffered,
      well under the 48 MiB limit on all of v5e/v6e/v7x).
    * dtype-aware sublane rounding (8 rows f32, 16 bf16, 32 int8/fp8).
    * batch >= 128: TB forced to a multiple of 128 so the (1, TB) output strip
      stays lane-dense (unmasked vst writeback), and TB is capped at
      round_up(cdiv(batch, 2), 128) so the grid has >= 2 tiles and both v7x
      TensorCores get work under dimension_semantics=("parallel",).
    """
    itemsize = jnp.dtype(dtype).itemsize
    sub = {4: 8, 2: 16, 1: 32}.get(itemsize, 8)
    budget_rows = max(sub, _X_TILE_BYTES // max(1, d * itemsize))
    if batch >= 128:
        rows = max(128, (budget_rows // 128) * 128)   # lane-dense output strips
        half = _round_up(pl.cdiv(batch, 2), 128)      # >= 2 grid tiles
        rows = min(rows, max(128, half))
    else:
        rows = min(_round_up(batch, sub), max(sub, (budget_rows // sub) * sub))
    return rows


@jax.jit
def reweight_forward(x, w):
    """x: [B, D]; w: [1, D] (PyTorch nn.Linear weight). Returns [B, 1] = x @ w.T."""
    batch, d = x.shape
    assert w.shape == (1, d)

    tb = _choose_block_rows(batch, d, x.dtype)
    num_tiles = pl.cdiv(batch, tb)   # ragged last block reads OOB rows; they are
                                     # sliced off below (never reduced over).

    out = pl.pallas_call(
        _reweight_kernel,
        # (num_tiles, 1, TB): last two dims of every block equal the array's,
        # and the result strip is lane-dense.
        out_shape=jax.ShapeDtypeStruct((num_tiles, 1, tb), x.dtype),
        grid_spec=pl.GridSpec(
            grid=(num_tiles,),
            in_specs=[
                pl.BlockSpec((tb, d), lambda i: (i, 0)),   # x row-block (pipelined)
                pl.BlockSpec((1, d), lambda i: (0, 0)),    # weight: grid-invariant
            ],
            out_specs=pl.BlockSpec((1, 1, tb), lambda i: (i, 0, 0)),
        ),
        compiler_params=pltpu.CompilerParams(
            dimension_semantics=("parallel",),             # megacore on v7x
            vmem_limit_bytes=_VMEM_LIMIT_BYTES,
        ),
    )(x, w)

    return out.reshape(num_tiles * tb)[:batch].reshape(batch, 1)


if __name__ == "__main__":
    key = jax.random.PRNGKey(0)
    kx, kw, kx2, kw2 = jax.random.split(key, 4)

    # --- Small demo shape (matches the module's toy usage) ---
    batch, input_size = 8, 32
    bound = 1.0 / (input_size ** 0.5)
    W = jax.random.uniform(kw, (1, input_size), dtype=jnp.float32,
                           minval=-bound, maxval=bound)   # PyTorch weight layout
    x = jax.random.normal(kx, (batch, input_size), dtype=jnp.float32)

    y = jax.block_until_ready(reweight_forward(x, W))
    y_ref = x @ W.T
    assert y.shape == (batch, 1)
    assert jnp.allclose(y, y_ref, atol=1e-5, rtol=1e-5)

    # --- Larger shape: exercises multi-tile pipelining + ragged last block ---
    batch2, input_size2 = 600, 1024
    bound2 = 1.0 / (input_size2 ** 0.5)
    W2 = jax.random.uniform(kw2, (1, input_size2), dtype=jnp.float32,
                            minval=-bound2, maxval=bound2)
    x2 = jax.random.normal(kx2, (batch2, input_size2), dtype=jnp.float32)

    y2 = jax.block_until_ready(reweight_forward(x2, W2))
    y2_ref = x2 @ W2.T
    assert y2.shape == (batch2, 1)
    assert jnp.allclose(y2, y2_ref, atol=1e-4, rtol=1e-4)

    print("KERNEL_OK")
</pallas_src>

<mosaic_0001>
module attributes {stable_mosaic.version = 11 : i64} {
  func.func @_reweight_kernel(%arg0: i32, %arg1: memref<8x32xf32, #tpu.memory_space<vmem>>, %arg2: memref<1x32xf32, #tpu.memory_space<vmem>>, %arg3: memref<1x1x8xf32, #tpu.memory_space<vmem>>) attributes {dimension_semantics = [#tpu.dimension_semantics<parallel>], iteration_bounds = array<i64: 1>, scalar_prefetch = 0 : i64, scratch_operands = 0 : i64, tpu.core_type = #tpu.core_type<tc>, window_params = [{transform_indices = @transform_0, window_bounds = array<i64: 8, 32>}, {pipeline_mode = #tpu.pipeline_mode<synchronous>, transform_indices = @transform_1, window_bounds = array<i64: 1, 32>}, {transform_indices = @transform_2, window_bounds = array<i64: 1, 1, 8>}]} {
    %c0 = arith.constant 0 : index
    %c0_0 = arith.constant 0 : index
    %0 = vector.load %arg2[%c0, %c0_0] : memref<1x32xf32, #tpu.memory_space<vmem>>, vector<1x32xf32>
    %c0_1 = arith.constant 0 : index
    %c0_2 = arith.constant 0 : index
    %1 = vector.load %arg1[%c0_1, %c0_2] : memref<8x32xf32, #tpu.memory_space<vmem>>, vector<8x32xf32>
    %cst = arith.constant dense<0.000000e+00> : vector<1x8xf32>
    %2 = tpu.matmul %0, %1, %cst {dimension_numbers = #tpu.dot_dimension_numbers<[1], [1], [0], [0], [0, 0, 1, 0], [], []>} : vector<1x32xf32>, vector<8x32xf32>, vector<1x8xf32> -> vector<1x8xf32>
    %3 = vector.shape_cast %2 : vector<1x8xf32> to vector<1x1x8xf32>
    %c0_3 = arith.constant 0 : index
    %c0_4 = arith.constant 0 : index
    %c0_5 = arith.constant 0 : index
    %4 = vector.load %arg3[%c0_3, %c0_4, %c0_5] : memref<1x1x8xf32, #tpu.memory_space<vmem>>, vector<1x1x8xf32>
    tpu.vector_store %arg3[%c0_3, %c0_4, %c0_5], %3 {strides = array<i32>} : memref<1x1x8xf32, #tpu.memory_space<vmem>>, vector<1x1x8xf32>,
    return
  }
  func.func @transform_0(%arg0: i32) -> (i32, i32) {
    %c0_i32 = arith.constant 0 : i32
    %c0_i32_0 = arith.constant 0 : i32
    return %arg0, %c0_i32 : i32, i32
  }
  func.func @transform_1(%arg0: i32) -> (i32, i32) {
    %c0_i32 = arith.constant 0 : i32
    %c0_i32_0 = arith.constant 0 : i32
    %c0_i32_1 = arith.constant 0 : i32
    return %c0_i32, %c0_i32_0 : i32, i32
  }
  func.func @transform_2(%arg0: i32) -> (i32, i32, i32) {
    %c0_i32 = arith.constant 0 : i32
    %c0_i32_0 = arith.constant 0 : i32
    %c0_i32_1 = arith.constant 0 : i32
    return %arg0, %c0_i32, %c0_i32_0 : i32, i32, i32
  }
}

</mosaic_0001>

<bundles_post_ra>
// kernel: reweight_forward.1
= control target key start
LH: loop header
LB: loop body
LE: loop exit
PB: predicated region body
PF: predicated region fallthrough
CT: control target
= control target key end

     0   :  { %7 = vsyncpa [#allocation3], 0  ;;  %s227_s0 = inlined_call_operand.hbm [shape: f32[8,32], index: 0, kind: input, shape index: {}]   ;;  %s228_s1 = inlined_call_operand.vmem [shape: f32[1,32], index: 1, kind: input, shape index: {}]   ;;  %s229_s2 = inlined_call_operand.hbm [shape: f32[1,1,8], index: 2, kind: output, shape index: {}]  }
   0x1   :  { %8 = vsyncpa [#allocation4], 0  ;;  %s181_s9 = smov [#allocation2]   ;;  %s133_s13 = scalar_lea.hbm %s227_s0, 128 }
   0x2   :  { %s15_s10 = sshll.u32 %s181_s9, 4  ;;  %p134_p0 = scmp.ne.s32.totalorder %s227_s0, %s133_s13  ;;  %s16_s10 = int_to_ptr.vmem [resolvable:$true] %s15_s10 }
   0x3   :  { %p137_p1 = scmp.lt.u32.totalorder %s133_s13, %s227_s0 }
   0x5   :  { %p139_p2 = pnand %p137_p1, %p134_p0 }
   0x7   :  { %142 = shalt.err (!%p139_p2)
}
   0x8   :  { %s143_s18 = scalar_lea.vmem %s16_s10, 128  ;;  %p148_p4 = scmp.lt.s32.totalorder %s16_s10, %s16_s10 }
   0x9   :  { %p144_p3 = scmp.ne.s32.totalorder %s16_s10, %s143_s18  ;;  %p149_p5 = scmp.lt.s32.totalorder %s143_s18, %s143_s18 }
   0xb   :  { %p150_p6 = por %p149_p5, %p148_p4 }
   0xd   :  { %p151_p7 = pnand %p150_p6, %p144_p3 }
   0xf   :  { %154 = shalt.err (!%p151_p7)
}
  0x10   :  { %18 = dma.hbm_to_vmem [thread:$0]  %s227_s0, 128, %s16_s10, [#allocation3]  }
  0x11   :  { %177 = dma.done.wait [#allocation3], 128  }
  0x12   :  { %178 = vsyncadd [#allocation3], 4294967168  ;;  %v182_v0 = vmov 0.0   ;;  %vm183_vm0 = vmmov 0   ;;  %vm26_vm1 = vcmask 261120   ;;  %v25_v1 = vld [vmem:[#allocation2] sm:$0xff] }
  0x13   :  { %124 = vmatprep.subr.mxu0 %v182_v0  ;;  %126 = vmatprep.mubr.msk.f32.mxu0 %vm183_vm0, %v182_v0  ;;  %v24_v2 = vld [vmem:[%s228_s1] sm:$0x1]  ;;  %s184_s23 = smov [#allocation5]   ;;  %vm103_vm2 = vcmask 57344  }
  0x14   :  { %125 = vmatpush3.xpose.msk.msra.mxu0 %vm26_vm1, %v25_v1  ;;  %s111_s24 = sshll.u32 %s184_s23, 4  ;;  %s112_s24 = int_to_ptr.vmem [resolvable:$true] %s111_s24 }
  0x15   :  { %s155_s0 = scalar_lea.vmem %s112_s24, 16  ;;  %s159_s25 = scalar_lea.vmem %s112_s24, 32 }
  0x16   :  { %p156_p8 = scmp.ne.s32.totalorder %s112_s24, %s155_s0  ;;  %p160_p9 = scmp.lt.s32.totalorder %s112_s24, %s112_s24 }
  0x17   :  { %127 = vmatmul.mubr.msk.f32.vlgmr.msra.gmra.mrb[0].mxu0 %vm26_vm1, %v24_v2  ;;  %p161_p10 = scmp.lt.s32.totalorder %s159_s25, %s155_s0 }
  0x19   :  { %p162_p11 = por %p161_p10, %p160_p9 }
  0x1b   :  { %p163_p12 = pnand %p162_p11, %p156_p8 }
  0xea   :  { %v99_v3 = vpop.f32.mrb[0].mxu0 }
  0xeb   :  { %v128_v4 = vpop.f32.mrb[1].mxu0  ;;  %104 = vst.msk [vmem:[#allocation5] sm:$0x1] %vm103_vm2, %v99_v3 }
  0xec   :  { %166 = shalt.err (!%p163_p12)
}
  0xed   :  { %s167_s1 = scalar_lea.hbm %s229_s2, 16 }
  0xee   :  { %p168_p13 = scmp.ne.s32.totalorder %s229_s2, %s167_s1  ;;  %p171_p0 = scmp.lt.u32.totalorder %s167_s1, %s229_s2 }
  0xf0   :  { %p173_p1 = pnand %p171_p0, %p168_p13 }
  0xf2   :  { %176 = shalt.err (!%p173_p1)
}
  0xf3   :  { %114 = dma.vmem_to_hbm [thread:$0]  %s112_s24, 16, %s229_s2, [#allocation4]  }
  0xf4   :  { %179 = dma.done.wait [#allocation4], 16  }
  0xf5   :  { %180 = vsyncadd [#allocation4], 4294967280 }
  0xf6   :  { %118 = vsyncpa [#allocation3], 1 }
  0xf7   :  { %119 = vsyncpa [#allocation4], 1 }

</bundles_post_ra>
